<compile_context>
chip_gen: v7x
topology: tpu7x:2x2x1
jax: 0.10.0
libtpu: 0.0.40
codegen_flags: <defaults>
</compile_context>

<pallas_src>
import functools

import jax
import jax.numpy as jnp
from jax.experimental import pallas as pl
from jax.experimental.pallas import tpu as pltpu

LANE = 128


def _round_up(n, m):
    return ((n + m - 1) // m) * m


def dqn_kernel(x_ref, w1_ref, w2_ref, w3_ref, b_ref, out_ref, *,
               h1_dim, h2_dim, n_pad):
    """Fused 3-layer MLP: relu(relu(x@W1+b1)@W2+b2)@W3+b3.

    x / W* are bf16 (MXU-native), biases + accumulation are f32.
    b_ref is the lane-concatenation [b1 | b2 | b3_padded].
    """
    x = x_ref[...]

    # Static, 128-aligned lane slices of the fused bias operand.
    b1 = b_ref[:, 0:h1_dim]
    b2 = b_ref[:, h1_dim:h1_dim + h2_dim]
    b3 = b_ref[:, h1_dim + h2_dim:h1_dim + h2_dim + n_pad]

    # Layer 1: MXU matmul (bf16 in, f32 acc) + bias + ReLU (f32 on VPU).
    h1 = jnp.dot(x, w1_ref[...], preferred_element_type=jnp.float32) + b1
    h1 = jnp.maximum(h1, 0.0)

    # Layer 2.
    h2 = jnp.dot(h1.astype(w2_ref.dtype), w2_ref[...],
                 preferred_element_type=jnp.float32) + b2
    h2 = jnp.maximum(h2, 0.0)

    # Output layer (lane-padded to a multiple of 128 -> unmasked stores).
    out = jnp.dot(h2.astype(w3_ref.dtype), w3_ref[...],
                  preferred_element_type=jnp.float32) + b3
    out_ref[...] = out.astype(out_ref.dtype)


def dqn_forward(x, params, *, tile_b=256):
    """Run the fused Pallas DQN forward pass.

    params: [(w1, b1), (w2, b2), (w3, b3)] with w_i stored as (in, out) and
    b_i as (1, out), all float32.
    """
    (w1, b1), (w2, b2), (w3, b3) = params
    B, S = x.shape
    H1 = w1.shape[1]
    H2 = w2.shape[1]
    A = w3.shape[1]
    n_pad = _round_up(A, LANE)  # lane-dense output width

    # --- wrapper-side layout plumbing (padding / dtype only, no compute) ---
    # Zero-pad the action dim so kernel stores are full 128-lane vst.
    w3p = jnp.zeros((H2, n_pad), w3.dtype).at[:, :A].set(w3)
    b3p = jnp.zeros((1, n_pad), b3.dtype).at[:, :A].set(b3)
    # Fuse the three biases into one operand (fewer DMA descriptors/buffers).
    b_cat = jnp.concatenate([b1, b2, b3p], axis=1)  # (1, H1+H2+n_pad), f32

    # Pad the batch to a multiple of the batch tile (tile must be mult. of 8).
    tb = min(tile_b, _round_up(B, 8))
    b_padded = _round_up(B, tb)
    if b_padded != B:
        x = jnp.concatenate(
            [x, jnp.zeros((b_padded - B, S), x.dtype)], axis=0)

    # bf16 matmul inputs; accumulation stays f32 inside the kernel.
    x_bf = x.astype(jnp.bfloat16)
    w1_bf = w1.astype(jnp.bfloat16)
    w2_bf = w2.astype(jnp.bfloat16)
    w3_bf = w3p.astype(jnp.bfloat16)

    grid = (b_padded // tb,)
    kernel = functools.partial(dqn_kernel, h1_dim=H1, h2_dim=H2, n_pad=n_pad)

    out = pl.pallas_call(
        kernel,
        out_shape=jax.ShapeDtypeStruct((b_padded, n_pad), jnp.float32),
        grid=grid,
        in_specs=[
            pl.BlockSpec((tb, S), lambda i: (i, 0)),          # x: tiled on batch
            pl.BlockSpec((S, H1), lambda i: (0, 0)),          # weights resident
            pl.BlockSpec((H1, H2), lambda i: (0, 0)),
            pl.BlockSpec((H2, n_pad), lambda i: (0, 0)),
            pl.BlockSpec((1, H1 + H2 + n_pad), lambda i: (0, 0)),  # fused biases
        ],
        out_specs=pl.BlockSpec((tb, n_pad), lambda i: (i, 0)),
        compiler_params=pltpu.CompilerParams(
            # Batch axis is embarrassingly parallel -> 2-TC sharding on v7x.
            dimension_semantics=("parallel",),
        ),
    )(x_bf, w1_bf, w2_bf, w3_bf, b_cat)

    return out[:B, :A]


def init_dqn_params(key, state_size, action_size, hidden_layers=(256, 256)):
    """Deterministic init mimicking PyTorch nn.Linear default:
    U(-1/sqrt(fan_in), 1/sqrt(fan_in)) for weights and biases."""
    layer_sizes = [state_size] + list(hidden_layers) + [action_size]
    params = []
    for i in range(len(layer_sizes) - 1):
        fan_in, fan_out = layer_sizes[i], layer_sizes[i + 1]
        key, kw, kb = jax.random.split(key, 3)
        bound = 1.0 / jnp.sqrt(fan_in)
        # stored as (in, out) — transposed relative to PyTorch's (out, in)
        w = jax.random.uniform(kw, (fan_in, fan_out), jnp.float32, -bound, bound)
        b = jax.random.uniform(kb, (1, fan_out), jnp.float32, -bound, bound)
        params.append((w, b))
    return params


def dqn_reference(x, params):
    """Pure-JAX reference mirroring the kernel's bf16-in / f32-acc math."""
    (w1, b1), (w2, b2), (w3, b3) = params
    bf = jnp.bfloat16
    h = jnp.dot(x.astype(bf), w1.astype(bf),
                preferred_element_type=jnp.float32) + b1
    h = jnp.maximum(h, 0.0)
    h = jnp.dot(h.astype(bf), w2.astype(bf),
                preferred_element_type=jnp.float32) + b2
    h = jnp.maximum(h, 0.0)
    return jnp.dot(h.astype(bf), w3.astype(bf),
                   preferred_element_type=jnp.float32) + b3


if __name__ == "__main__":
    key = jax.random.PRNGKey(0)
    key, kx = jax.random.split(key)

    batch = 20            # deliberately not a multiple of 8 -> exercises padding
    state_size = 16
    action_size = 8
    hidden_layers = (256, 256)   # PyTorch module default

    x = jax.random.normal(kx, (batch, state_size), jnp.float32)
    params = init_dqn_params(key, state_size, action_size, hidden_layers)

    out = dqn_forward(x, params)
    out = jax.block_until_ready(out)

    ref = dqn_reference(x, params)
    assert out.shape == (batch, action_size), out.shape
    assert jnp.allclose(out, ref, atol=1e-2, rtol=1e-2), "mismatch vs reference"

    print("KERNEL_OK")
</pallas_src>

<mosaic_0001>
module attributes {stable_mosaic.version = 11 : i64} {
  func.func @dqn_kernel(%arg0: i32, %arg1: memref<24x16xbf16, #tpu.memory_space<vmem>>, %arg2: memref<16x256xbf16, #tpu.memory_space<vmem>>, %arg3: memref<256x256xbf16, #tpu.memory_space<vmem>>, %arg4: memref<256x128xbf16, #tpu.memory_space<vmem>>, %arg5: memref<1x640xf32, #tpu.memory_space<vmem>>, %arg6: memref<24x128xf32, #tpu.memory_space<vmem>>) attributes {dimension_semantics = [#tpu.dimension_semantics<parallel>], iteration_bounds = array<i64: 1>, scalar_prefetch = 0 : i64, scratch_operands = 0 : i64, tpu.core_type = #tpu.core_type<tc>, window_params = [{transform_indices = @transform_0, window_bounds = array<i64: 24, 16>}, {pipeline_mode = #tpu.pipeline_mode<synchronous>, transform_indices = @transform_1, window_bounds = array<i64: 16, 256>}, {pipeline_mode = #tpu.pipeline_mode<synchronous>, transform_indices = @transform_2, window_bounds = array<i64: 256, 256>}, {pipeline_mode = #tpu.pipeline_mode<synchronous>, transform_indices = @transform_3, window_bounds = array<i64: 256, 128>}, {pipeline_mode = #tpu.pipeline_mode<synchronous>, transform_indices = @transform_4, window_bounds = array<i64: 1, 640>}, {transform_indices = @transform_5, window_bounds = array<i64: 24, 128>}]} {
    %c0 = arith.constant 0 : index
    %c0_0 = arith.constant 0 : index
    %0 = vector.load %arg1[%c0, %c0_0] : memref<24x16xbf16, #tpu.memory_space<vmem>>, vector<24x16xbf16>
    %c0_1 = arith.constant 0 : index
    %c0_2 = arith.constant 0 : index
    %1 = vector.load %arg5[%c0_1, %c0_2] : memref<1x640xf32, #tpu.memory_space<vmem>>, vector<1x256xf32>
    %c0_3 = arith.constant 0 : index
    %c256 = arith.constant 256 : index
    %2 = vector.load %arg5[%c0_3, %c256] : memref<1x640xf32, #tpu.memory_space<vmem>>, vector<1x256xf32>
    %c0_4 = arith.constant 0 : index
    %c512 = arith.constant 512 : index
    %3 = vector.load %arg5[%c0_4, %c512] : memref<1x640xf32, #tpu.memory_space<vmem>>, vector<1x128xf32>
    %c0_5 = arith.constant 0 : index
    %c0_6 = arith.constant 0 : index
    %4 = vector.load %arg2[%c0_5, %c0_6] : memref<16x256xbf16, #tpu.memory_space<vmem>>, vector<16x256xbf16>
    %cst = arith.constant dense<0.000000e+00> : vector<24x256xf32>
    %5 = tpu.matmul %0, %4, %cst {dimension_numbers = #tpu.dot_dimension_numbers<[1], [0], [0], [1], [0, 0, 1, 1], [], []>} : vector<24x16xbf16>, vector<16x256xbf16>, vector<24x256xf32> -> vector<24x256xf32>
    %6 = vector.broadcast %1 : vector<1x256xf32> to vector<24x256xf32>
    %7 = arith.addf %5, %6 : vector<24x256xf32>
    %cst_7 = arith.constant 0.000000e+00 : f32
    %8 = vector.broadcast %cst_7 : f32 to vector<24x256xf32>
    %9 = arith.maximumf %7, %8 : vector<24x256xf32>
    %10 = arith.truncf %9 : vector<24x256xf32> to vector<24x256xbf16>
    %c0_8 = arith.constant 0 : index
    %c0_9 = arith.constant 0 : index
    %11 = vector.load %arg3[%c0_8, %c0_9] : memref<256x256xbf16, #tpu.memory_space<vmem>>, vector<256x256xbf16>
    %cst_10 = arith.constant dense<0.000000e+00> : vector<24x256xf32>
    %12 = tpu.matmul %10, %11, %cst_10 {dimension_numbers = #tpu.dot_dimension_numbers<[1], [0], [0], [1], [0, 0, 1, 1], [], []>} : vector<24x256xbf16>, vector<256x256xbf16>, vector<24x256xf32> -> vector<24x256xf32>
    %13 = vector.broadcast %2 : vector<1x256xf32> to vector<24x256xf32>
    %14 = arith.addf %12, %13 : vector<24x256xf32>
    %cst_11 = arith.constant 0.000000e+00 : f32
    %15 = vector.broadcast %cst_11 : f32 to vector<24x256xf32>
    %16 = arith.maximumf %14, %15 : vector<24x256xf32>
    %17 = arith.truncf %16 : vector<24x256xf32> to vector<24x256xbf16>
    %c0_12 = arith.constant 0 : index
    %c0_13 = arith.constant 0 : index
    %18 = vector.load %arg4[%c0_12, %c0_13] : memref<256x128xbf16, #tpu.memory_space<vmem>>, vector<256x128xbf16>
    %cst_14 = arith.constant dense<0.000000e+00> : vector<24x128xf32>
    %19 = tpu.matmul %17, %18, %cst_14 {dimension_numbers = #tpu.dot_dimension_numbers<[1], [0], [0], [1], [0, 0, 1, 1], [], []>} : vector<24x256xbf16>, vector<256x128xbf16>, vector<24x128xf32> -> vector<24x128xf32>
    %20 = vector.broadcast %3 : vector<1x128xf32> to vector<24x128xf32>
    %21 = arith.addf %19, %20 : vector<24x128xf32>
    %c0_15 = arith.constant 0 : index
    %c0_16 = arith.constant 0 : index
    %22 = vector.load %arg6[%c0_15, %c0_16] : memref<24x128xf32, #tpu.memory_space<vmem>>, vector<24x128xf32>
    tpu.vector_store %arg6[%c0_15, %c0_16], %21 {strides = array<i32>} : memref<24x128xf32, #tpu.memory_space<vmem>>, vector<24x128xf32>,
    return
  }
  func.func @transform_0(%arg0: i32) -> (i32, i32) {
    %c0_i32 = arith.constant 0 : i32
    %c0_i32_0 = arith.constant 0 : i32
    return %arg0, %c0_i32 : i32, i32
  }
  func.func @transform_1(%arg0: i32) -> (i32, i32) {
    %c0_i32 = arith.constant 0 : i32
    %c0_i32_0 = arith.constant 0 : i32
    %c0_i32_1 = arith.constant 0 : i32
    return %c0_i32, %c0_i32_0 : i32, i32
  }
  func.func @transform_2(%arg0: i32) -> (i32, i32) {
    %c0_i32 = arith.constant 0 : i32
    %c0_i32_0 = arith.constant 0 : i32
    %c0_i32_1 = arith.constant 0 : i32
    return %c0_i32, %c0_i32_0 : i32, i32
  }
  func.func @transform_3(%arg0: i32) -> (i32, i32) {
    %c0_i32 = arith.constant 0 : i32
    %c0_i32_0 = arith.constant 0 : i32
    %c0_i32_1 = arith.constant 0 : i32
    return %c0_i32, %c0_i32_0 : i32, i32
  }
  func.func @transform_4(%arg0: i32) -> (i32, i32) {
    %c0_i32 = arith.constant 0 : i32
    %c0_i32_0 = arith.constant 0 : i32
    %c0_i32_1 = arith.constant 0 : i32
    return %c0_i32, %c0_i32_0 : i32, i32
  }
  func.func @transform_5(%arg0: i32) -> (i32, i32) {
    %c0_i32 = arith.constant 0 : i32
    %c0_i32_0 = arith.constant 0 : i32
    return %arg0, %c0_i32 : i32, i32
  }
}

</mosaic_0001>

<bundles_post_ra>
// kernel: tpu_custom_call.1
= control target key start
LH: loop header
LB: loop body
LE: loop exit
PB: predicated region body
PF: predicated region fallthrough
CT: control target
= control target key end

     0   :  { %10 = vsyncpa [#allocation3], 0  ;;  %s957_s0 = inlined_call_operand.vmem [shape: bf16[24,16], index: 0, kind: input, shape index: {}]   ;;  %s958_s1 = inlined_call_operand.vmem [shape: bf16[16,256], index: 1, kind: input, shape index: {}]   ;;  %s959_s2 = inlined_call_operand.hbm [shape: bf16[256,256], index: 2, kind: input, shape index: {}]   ;;  %s960_s3 = inlined_call_operand.hbm [shape: bf16[256,128], index: 3, kind: input, shape index: {}]   ;;  %s961_s4 = inlined_call_operand.vmem [shape: f32[1,640], index: 4, kind: input, shape index: {}]   ;;  %s962_s5 = inlined_call_operand.hbm [shape: f32[24,128], index: 5, kind: output, shape index: {}]  }
   0x1   :  { %11 = vsyncpa [#allocation6], 0 }
   0x2   :  { %12 = vsyncpa [#allocation4], 0  ;;  %s854_s18 = smov [#allocation2]   ;;  %s782_s22 = scalar_lea.hbm %s959_s2, 4096 }
   0x3   :  { %s22_s19 = sshll.u32 %s854_s18, 4  ;;  %p783_p0 = scmp.ne.s32.totalorder %s959_s2, %s782_s22  ;;  %s23_s19 = int_to_ptr.vmem [resolvable:$true] %s22_s19 }
   0x4   :  { %p786_p1 = scmp.lt.u32.totalorder %s782_s22, %s959_s2 }
   0x6   :  { %p788_p2 = pnand %p786_p1, %p783_p0 }
   0x8   :  { %791 = shalt.err (!%p788_p2)
}
   0x9   :  { %s792_s27 = scalar_lea.vmem %s23_s19, 4096  ;;  %p797_p4 = scmp.lt.s32.totalorder %s23_s19, %s23_s19 }
   0xa   :  { %p793_p3 = scmp.ne.s32.totalorder %s23_s19, %s792_s27  ;;  %p798_p5 = scmp.lt.s32.totalorder %s792_s27, %s792_s27 }
   0xc   :  { %p799_p6 = por %p798_p5, %p797_p4 }
   0xe   :  { %p800_p7 = pnand %p799_p6, %p793_p3 }
  0x10   :  { %803 = shalt.err (!%p800_p7)
}
  0x11   :  { %s855_s28 = smov 128   ;;  %s856_s29 = smov 8  }
  0x12   :  { %28 = dma.hbm_to_vmem [thread:$0]  %s959_s2, 4096, %s23_s19, [#allocation3], %s855_s28, %s855_s28, %s856_s29  }
  0x13   :  { %s857_s7 = smov [#allocation5]   ;;  %s804_s11 = scalar_lea.hbm %s960_s3, 2048 }
  0x14   :  { %s34_s8 = sshll.u32 %s857_s7, 4  ;;  %p805_p8 = scmp.ne.s32.totalorder %s960_s3, %s804_s11  ;;  %s35_s8 = int_to_ptr.vmem [resolvable:$true] %s34_s8 }
  0x15   :  { %p808_p9 = scmp.lt.u32.totalorder %s804_s11, %s960_s3 }
  0x17   :  { %p810_p10 = pnand %p808_p9, %p805_p8 }
  0x19   :  { %813 = shalt.err (!%p810_p10)
}
  0x1a   :  { %s814_s16 = scalar_lea.vmem %s35_s8, 2048  ;;  %p819_p12 = scmp.lt.s32.totalorder %s35_s8, %s35_s8 }
  0x1b   :  { %p815_p11 = scmp.ne.s32.totalorder %s35_s8, %s814_s16  ;;  %p820_p13 = scmp.lt.s32.totalorder %s814_s16, %s814_s16 }
  0x1d   :  { %p821_p0 = por %p820_p13, %p819_p12 }
  0x1f   :  { %p822_p1 = pnand %p821_p0, %p815_p11 }
  0x21   :  { %825 = shalt.err (!%p822_p1)
}
  0x22   :  { %s858_s2 = smov 64   ;;  %s859_s17 = smov 4  }
  0x23   :  { %40 = dma.hbm_to_vmem [thread:$0]  %s960_s3, 2048, %s35_s8, [#allocation6], %s858_s2, %s858_s2, %s859_s17  }
  0x24   :  { %848 = dma.done.wait [#allocation3], 4096  }
  0x25   :  { %849 = vsyncadd [#allocation3], 4294963200 }
  0x26   :  { %850 = dma.done.wait [#allocation6], 2048  }
  0x27   :  { %851 = vsyncadd [#allocation6], 4294965248  ;;  %v860_v0 = vmov 0   ;;  %v713_v1 = vld [vmem:[%s958_s1 + $0x4] ss:$8 sps:$4 sm:$0xff]   ;;  %vm87_vm0 = vcmask 130048   ;;  %v59_v48 = vlaneseq }
  0x28   :  { %126 = vmatprep.mubr.bf16.mxu0 %v860_v0  ;;  %v715_v2 = vld [vmem:[%s958_s1] ss:$8 sps:$4 sm:$0xff]   ;;  %94 = vmatprep.subr.bf16.mxu0 %v713_v1  ;;  %v718_v4 = vld [vmem:[#allocation2 + $0x4] ss:$8 sps:$4 sm:$0xff]   ;;  %v720_v5 = vld [vmem:[#allocation2] ss:$8 sps:$4 sm:$0xff]  }
  0x29   :  { %v716_v3 = vld [vmem:[%s957_s0] sm:$0xff]   ;;  %95 = vmatpush1.bf16.msra.mxu0 %v715_v2  ;;  %358 = vmatprep.subr.bf16.mxu1 %v718_v4  ;;  %v724_v8 = vld [vmem:[#allocation2 + $0x24] ss:$8 sps:$4 sm:$0xff]   ;;  %v717_v9 = vld [vmem:[%s957_s0 + $0x8] ss:$0 sps:$4 sm:$0xff]   ;;  %v60_v49 = vshrl.u32 %v59_v48, 7 }
  0x2a   :  { %v721_v6 = vld [vmem:[#allocation2 + $0x14] ss:$8 sps:$4 sm:$0xff]   ;;  %359 = vmatpush1.bf16.msra.mxu1 %v720_v5  ;;  %v723_v7 = vld [vmem:[#allocation2 + $0x10] ss:$8 sps:$4 sm:$0xff]   ;;  %v726_v10 = vld [vmem:[#allocation2 + $0x20] ss:$8 sps:$4 sm:$0xff]  }
  0x2b   :  { %360 = vmatprep.subr.bf16.mxu1 %v721_v6  ;;  %v727_v11 = vld [vmem:[#allocation2 + $0x34] ss:$8 sps:$4 sm:$0xff]   ;;  %v729_v12 = vld [vmem:[#allocation2 + $0x30] ss:$8 sps:$4 sm:$0xff]   ;;  %v730_v13 = vld [vmem:[#allocation2 + $0x44] ss:$8 sps:$4 sm:$0xff]  }
  0x2c   :  { %626 = vmatmul.mubr.msk.bf16.vlgmr.msra.gmra.mrb[0].mxu0 %vm87_vm0, %v716_v3  ;;  %v732_v14 = vld [vmem:[#allocation2 + $0x40] ss:$8 sps:$4 sm:$0xff]   ;;  %v733_v15 = vld [vmem:[#allocation2 + $0x54] ss:$8 sps:$4 sm:$0xff]   ;;  %v735_v16 = vld [vmem:[#allocation2 + $0x50] ss:$8 sps:$4 sm:$0xff]  }
  0x2d   :  { %136 = vmatprep.mubr.bf16.mxu0 %v860_v0  ;;  %v736_v17 = vld [vmem:[#allocation2 + $0x64] ss:$8 sps:$4 sm:$0xff]   ;;  %v738_v18 = vld [vmem:[#allocation2 + $0x60] ss:$8 sps:$4 sm:$0xff]   ;;  %v739_v19 = vld [vmem:[#allocation2 + $0x74] ss:$8 sps:$4 sm:$0xff]  }
  0x2e   :  { %361 = vmatpush1.bf16.msra.mxu1 %v723_v7  ;;  %v741_v20 = vld [vmem:[#allocation2 + $0x70] ss:$8 sps:$4 sm:$0xff]   ;;  %v742_v21 = vld [vmem:[#allocation2 + $0x84] ss:$8 sps:$4 sm:$0xff]   ;;  %v744_v22 = vld [vmem:[#allocation2 + $0x80] ss:$8 sps:$4 sm:$0xff]  }
  0x2f   :  { %362 = vmatprep.subr.bf16.mxu1 %v724_v8  ;;  %v745_v23 = vld [vmem:[#allocation2 + $0x94] ss:$8 sps:$4 sm:$0xff]   ;;  %v747_v24 = vld [vmem:[#allocation2 + $0x90] ss:$8 sps:$4 sm:$0xff]   ;;  %v748_v25 = vld [vmem:[#allocation2 + $0xa4] ss:$8 sps:$4 sm:$0xff]  }
  0x30   :  { %v750_v26 = vld [vmem:[#allocation2 + $0xa0] ss:$8 sps:$4 sm:$0xff]   ;;  %v751_v27 = vld [vmem:[#allocation2 + $0xb4] ss:$8 sps:$4 sm:$0xff]   ;;  %v753_v28 = vld [vmem:[#allocation2 + $0xb0] ss:$8 sps:$4 sm:$0xff]  }
  0x31   :  { %v754_v29 = vld [vmem:[#allocation2 + $0xc4] ss:$8 sps:$4 sm:$0xff]   ;;  %v756_v30 = vld [vmem:[#allocation2 + $0xc0] ss:$8 sps:$4 sm:$0xff]   ;;  %v757_v31 = vld [vmem:[#allocation2 + $0xd4] ss:$8 sps:$4 sm:$0xff]  }
  0x32   :  { %363 = vmatpush1.bf16.msra.mxu1 %v726_v10  ;;  %v759_v32 = vld [vmem:[#allocation2 + $0xd0] ss:$8 sps:$4 sm:$0xff]   ;;  %v760_v33 = vld [vmem:[#allocation2 + $0xe4] ss:$8 sps:$4 sm:$0xff]   ;;  %v762_v34 = vld [vmem:[#allocation2 + $0xe0] ss:$8 sps:$4 sm:$0xff]  }
  0x33   :  { %364 = vmatprep.subr.bf16.mxu1 %v727_v11  ;;  %v763_v35 = vld [vmem:[#allocation2 + $0xf4] ss:$8 sps:$4 sm:$0xff]   ;;  %v765_v36 = vld [vmem:[#allocation2 + $0xf0] ss:$8 sps:$4 sm:$0xff]   ;;  %v766_v37 = vld [vmem:[#allocation5 + $0x40] sm:$0xff]   ;;  %v61_v50 = vsub.s32 0, %v60_v49 }
  0x34   :  { %627 = vmatmul.mubr.msk.bf16.gmra.mrb[4].mxu0 %vm87_vm0, %v717_v9  ;;  %v767_v38 = vld [vmem:[#allocation5] sm:$0xff]   ;;  %v768_v39 = vld [vmem:[#allocation5 + $0x48] sm:$0xff]   ;;  %677 = vmatprep.subr.bf16.mxu0 %v766_v37  ;;  %v770_v41 = vld [vmem:[#allocation5 + $0x50] sm:$0xff]   ;;  %v65_v52 = vsub.s32 1, %v60_v49  ;;  %s861_s8 = smov [#allocation7]  }
  0x35   :  { %678 = vmatpush3.bf16.msra.mxu0 %v767_v38  ;;  %v769_v40 = vld [vmem:[#allocation5 + $0x8] sm:$0xff]   ;;  %v771_v42 = vld [vmem:[#allocation5 + $0x10] sm:$0xff]   ;;  %v772_v43 = vld [vmem:[#allocation5 + $0x58] sm:$0xff]   ;;  %s609_s9 = sshll.u32 %s861_s8, 4  ;;  %s610_s9 = int_to_ptr.vmem [resolvable:$true] %s609_s9 }
  0x36   :  { %365 = vmatpush1.bf16.msra.mxu1 %v729_v12  ;;  %679 = vmatprep.subr.bf16.mxu0 %v768_v39  ;;  %v773_v44 = vld [vmem:[#allocation5 + $0x18] sm:$0xff]   ;;  %v774_v45 = vld [vmem:[#allocation5 + $0x60] sm:$0xff]   ;;  %v776_v47 = vld [vmem:[#allocation5 + $0x68] sm:$0xff]   ;;  %p831_p3 = scmp.lt.s32.totalorder %s610_s9, %s610_s9 }
  0x37   :  { %366 = vmatprep.subr.bf16.mxu1 %v730_v13  ;;  %v775_v46 = vld [vmem:[#allocation5 + $0x20] sm:$0xff]   ;;  %v53_v51 = vld [vmem:[%s961_s4] sm:$0x3]  ;;  %v660_v48 = vld [vmem:[%s961_s4 + $0x4] ss:$0 sm:$0xff] }
  0x38   :  { %v62_v53 = vrot.slane %v53_v51, %v61_v50  ;;  %v66_v54 = vrot.slane %v53_v51, %v65_v52 }
  0x39   :  { %680 = vmatpush3.bf16.msra.mxu0 %v769_v40 }
  0x3a   :  { %367 = vmatpush1.bf16.msra.mxu1 %v732_v14  ;;  %681 = vmatprep.subr.bf16.mxu0 %v770_v41 }
  0x3b   :  { %368 = vmatprep.subr.bf16.mxu1 %v733_v15  ;;  %v777_v15 = vld [vmem:[#allocation5 + $0x28] sm:$0xff]  }
  0x3d   :  { %682 = vmatpush3.bf16.msra.mxu0 %v771_v42 }
  0x3e   :  { %369 = vmatpush1.bf16.msra.mxu1 %v735_v16  ;;  %683 = vmatprep.subr.bf16.mxu0 %v772_v43  ;;  %v778_v16 = vld [vmem:[#allocation5 + $0x70] sm:$0xff]  }
  0x3f   :  { %370 = vmatprep.subr.bf16.mxu1 %v736_v17  ;;  %v779_v17 = vld [vmem:[#allocation5 + $0x30] sm:$0xff]  }
  0x41   :  { %684 = vmatpush3.bf16.msra.mxu0 %v773_v44 }
  0x42   :  { %371 = vmatpush1.bf16.msra.mxu1 %v738_v18  ;;  %685 = vmatprep.subr.bf16.mxu0 %v774_v45  ;;  %v780_v18 = vld [vmem:[#allocation5 + $0x78] sm:$0xff]  }
  0x43   :  { %372 = vmatprep.subr.bf16.mxu1 %v739_v19  ;;  %v781_v19 = vld [vmem:[#allocation5 + $0x38] sm:$0xff]  }
  0x45   :  { %686 = vmatpush3.bf16.msra.mxu0 %v775_v46 }
  0x46   :  { %373 = vmatpush1.bf16.msra.mxu1 %v741_v20  ;;  %687 = vmatprep.subr.bf16.mxu0 %v776_v47  ;;  %v54_v20 = vld [vmem:[%s961_s4 + $0x2] sm:$0x3]  ;;  %s826_s4 = scalar_lea.vmem %s610_s9, 384 }
  0x47   :  { %374 = vmatprep.subr.bf16.mxu1 %v742_v21  ;;  %v191_v21 = vrot.slane %v54_v20, %v61_v50  ;;  %p827_p2 = scmp.ne.s32.totalorder %s610_s9, %s826_s4  ;;  %p832_p4 = scmp.lt.s32.totalorder %s826_s4, %s826_s4 }
  0x49   :  { %688 = vmatpush3.bf16.msra.mxu0 %v777_v15  ;;  %p833_p5 = por %p832_p4, %p831_p3 }
  0x4a   :  { %375 = vmatpush1.bf16.msra.mxu1 %v744_v22  ;;  %689 = vmatprep.subr.bf16.mxu0 %v778_v16  ;;  %v195_v22 = vrot.slane %v54_v20, %v65_v52 }
  0x4b   :  { %376 = vmatprep.subr.bf16.mxu1 %v745_v23  ;;  %p834_p6 = pnand %p833_p5, %p827_p2 }
  0x4d   :  { %690 = vmatpush3.bf16.msra.mxu0 %v779_v17 }
  0x4e   :  { %377 = vmatpush1.bf16.msra.mxu1 %v747_v24  ;;  %691 = vmatprep.subr.bf16.mxu0 %v780_v18 }
  0x4f   :  { %378 = vmatprep.subr.bf16.mxu1 %v748_v25 }
  0x51   :  { %692 = vmatpush3.bf16.msra.mxu0 %v781_v19 }
  0x52   :  { %379 = vmatpush1.bf16.msra.mxu1 %v750_v26 }
  0x53   :  { %380 = vmatprep.subr.bf16.mxu1 %v751_v27 }
  0x56   :  { %381 = vmatpush1.bf16.msra.mxu1 %v753_v28 }
  0x57   :  { %382 = vmatprep.subr.bf16.mxu1 %v754_v29 }
  0x5a   :  { %383 = vmatpush1.bf16.msra.mxu1 %v756_v30 }
  0x5b   :  { %384 = vmatprep.subr.bf16.mxu1 %v757_v31 }
  0x5e   :  { %385 = vmatpush1.bf16.msra.mxu1 %v759_v32 }
  0x5f   :  { %386 = vmatprep.subr.bf16.mxu1 %v760_v33 }
  0x62   :  { %387 = vmatpush1.bf16.msra.mxu1 %v762_v34 }
  0x63   :  { %388 = vmatprep.subr.bf16.mxu1 %v763_v35 }
  0x66   :  { %389 = vmatpush1.bf16.msra.mxu1 %v765_v36 }
  0xff   :  { %v128_v55 = vpop.f32.mrb[0].mxu0 }
 0x100   :  { %v129_v56 = vadd.f32 %v128_v55, %v62_v53  ;;  %v130_v57 = vpop.f32.mrb[1].mxu0 }
 0x101   :  { %v131_v58 = vadd.f32 %v130_v57, %v66_v54  ;;  %v132_v59 = vpop.f32.mrb[2].mxu0 }
 0x102   :  { %v133_v60 = vadd.f32 %v132_v59, %v62_v53  ;;  %v134_v61 = vpop.f32.mrb[3].mxu0  ;;  %v145_v63 = vmax.f32 %v129_v56, 0.0 }
 0x103   :  { %v135_v62 = vadd.f32 %v134_v61, %v66_v54  ;;  %v146_v1 = vmax.f32 %v131_v58, 0.0 }
 0x104   :  { %v147_v0 = vmax.f32 %v133_v60, 0.0 }
 0x105   :  { %v148_v2 = vmax.f32 %v135_v62, 0.0 }
 0x106   :  { %v151_v3 = vpack.c.bf16 %v147_v0, %v145_v63 }
 0x107   :  { %v138_v4 = vpop.f32.mrb[4].mxu0  ;;  %v152_v5 = vpack.c.bf16 %v148_v2, %v146_v1 }
 0x108   :  { %v139_v6 = vadd.f32 %v138_v4, %v62_v53  ;;  %v140_v7 = vpop.f32.mrb[5].mxu0 }
 0x109   :  { %v141_v8 = vadd.f32 %v140_v7, %v66_v54  ;;  %390 = vmatprep.mubr.bf16.mxu1 %v152_v5  ;;  %v142_v9 = vpop.f32.mrb[6].mxu0 }
 0x10a   :  { %v149_v10 = vmax.f32 %v139_v6, 0.0  ;;  %391 = vmatmul.mubr.bf16.vlgmr.msra.gmra.mrb[0].mxu1 %v151_v3  ;;  %v143_v11 = vpop.f32.mrb[7].mxu0 }
 0x10b   :  { %v150_v12 = vmax.f32 %v141_v8, 0.0 }
 0x10c   :  { %v153_v14 = vpack.c.bf16 %v149_v10, %v149_v10 }
 0x10d   :  { %v154_v13 = vpack.c.bf16 %v150_v12, %v150_v12 }
 0x10f   :  { %400 = vmatprep.mubr.bf16.mxu1 %v154_v13 }
 0x112   :  { %401 = vmatmul.mubr.bf16.gmra.mrb[4].mxu1 %v153_v14 }
 0x1dd   :  { %v392_v23 = vpop.f32.mrb[0].mxu1 }
 0x1de   :  { %v393_v24 = vadd.f32 %v392_v23, %v191_v21  ;;  %v394_v25 = vpop.f32.mrb[1].mxu1 }
 0x1df   :  { %v395_v26 = vadd.f32 %v394_v25, %v195_v22  ;;  %v396_v27 = vpop.f32.mrb[2].mxu1 }
 0x1e0   :  { %v397_v28 = vadd.f32 %v396_v27, %v191_v21  ;;  %v398_v29 = vpop.f32.mrb[3].mxu1  ;;  %v409_v31 = vmax.f32 %v393_v24, 0.0 }
 0x1e1   :  { %v399_v30 = vadd.f32 %v398_v29, %v195_v22  ;;  %v410_v33 = vmax.f32 %v395_v26, 0.0 }
 0x1e2   :  { %v411_v32 = vmax.f32 %v397_v28, 0.0 }
 0x1e3   :  { %v412_v34 = vmax.f32 %v399_v30, 0.0 }
 0x1e4   :  { %v415_v35 = vpack.c.bf16 %v411_v32, %v409_v31 }
 0x1e5   :  { %v416_v36 = vpack.c.bf16 %v412_v34, %v410_v33  ;;  %v402_v37 = vpop.f32.mrb[4].mxu1 }
 0x1e6   :  { %v403_v38 = vadd.f32 %v402_v37, %v191_v21  ;;  %v404_v39 = vpop.f32.mrb[5].mxu1 }
 0x1e7   :  { %v405_v40 = vadd.f32 %v404_v39, %v195_v22  ;;  %v406_v41 = vpop.f32.mrb[6].mxu1  ;;  %585 = vmatprep.mubr.bf16.mxu0 %v416_v36 }
 0x1e8   :  { %v407_v42 = vpop.f32.mrb[7].mxu1  ;;  %586 = vmatmul.mubr.bf16.vlgmr.msra.gmra.mrb[8].mxu0 %v415_v35  ;;  %v413_v44 = vmax.f32 %v403_v38, 0.0 }
 0x1e9   :  { %v414_v43 = vmax.f32 %v405_v40, 0.0 }
 0x1ea   :  { %v417_v46 = vpack.c.bf16 %v413_v44, %v413_v44 }
 0x1eb   :  { %v418_v45 = vpack.c.bf16 %v414_v43, %v414_v43 }
 0x1ed   :  { %593 = vmatprep.mubr.bf16.mxu0 %v418_v45 }
 0x1f0   :  { %594 = vmatmul.mubr.bf16.gmra.mrb[12].mxu0 %v417_v46 }
 0x2bb   :  { %v693_v47 = vpop.f32.mrb[8].mxu0 }
 0x2bc   :  { %v694_v49 = vpop.f32.mrb[9].mxu0 }
 0x2bd   :  { %v695_v50 = vadd.f32 %v694_v49, %v693_v47  ;;  %v696_v51 = vpop.f32.mrb[10].mxu0 }
 0x2be   :  { %v697_v52 = vpop.f32.mrb[11].mxu0 }
 0x2bf   :  { %v588_v53 = vadd.f32 %v695_v50, %v660_v48  ;;  %v698_v54 = vadd.f32 %v697_v52, %v696_v51 }
 0x2c1   :  { %601 = vst [vmem:[#allocation7] sm:$0xff] %v588_v53  ;;  %v591_v55 = vadd.f32 %v698_v54, %v660_v48 }
 0x2c3   :  { %602 = vst [vmem:[#allocation7 + $0x8] sm:$0xff] %v591_v55  ;;  %v699_v56 = vpop.f32.mrb[12].mxu0 }
 0x2c4   :  { %v700_v57 = vpop.f32.mrb[13].mxu0 }
 0x2c5   :  { %v701_v58 = vadd.f32 %v700_v57, %v699_v56  ;;  %v702_v59 = vpop.f32.mrb[14].mxu0 }
 0x2c6   :  { %v703_v60 = vpop.f32.mrb[15].mxu0 }
 0x2c7   :  { %v596_v61 = vadd.f32 %v701_v58, %v660_v48 }
 0x2c9   :  { %603 = vst [vmem:[#allocation7 + $0x10] sm:$0xff] %v596_v61 }
 0x2ca   :  { %837 = shalt.err (!%p834_p6)
}
 0x2cb   :  { %s838_s12 = scalar_lea.hbm %s962_s5, 384 }
 0x2cc   :  { %p839_p7 = scmp.ne.s32.totalorder %s962_s5, %s838_s12  ;;  %p842_p8 = scmp.lt.u32.totalorder %s838_s12, %s962_s5 }
 0x2ce   :  { %p844_p9 = pnand %p842_p8, %p839_p7 }
 0x2d0   :  { %847 = shalt.err (!%p844_p9)
}
 0x2d1   :  { %615 = dma.vmem_to_hbm [thread:$0]  %s610_s9, 384, %s962_s5, [#allocation4], %s855_s28, %s855_s28, %s856_s29  }
 0x2d2   :  { %852 = dma.done.wait [#allocation4], 384  }
 0x2d3   :  { %853 = vsyncadd [#allocation4], 4294966912 }
 0x2d4   :  { %619 = vsyncpa [#allocation3], 1 }
 0x2d5   :  { %620 = vsyncpa [#allocation6], 1 }
 0x2d6   :  { %621 = vsyncpa [#allocation4], 1 }

</bundles_post_ra>
